<compile_context>
chip_gen: v7x
topology: tpu7x:2x2x1
jax: 0.10.0
libtpu: 0.0.40
codegen_flags: <defaults>
</compile_context>

<pallas_src>
import jax
import jax.numpy as jnp
import numpy as np
from jax.experimental import pallas as pl
from jax.experimental.pallas import tpu as pltpu


def _beamformer_kernel(h_ref, w_ref, out_ref):
    # (TB, 2*A_Rx*A_Tx) @ (2*A_Rx*A_Tx, B_Rx*2*B_Tx) -> (TB, B_Rx*2*B_Tx)
    # Operands matched to W's dtype (bf16 by default), accumulation in f32.
    out_ref[...] = jnp.dot(h_ref[...].astype(w_ref.dtype), w_ref[...],
                           preferred_element_type=jnp.float32)


def _build_fused_operator(theta_tx, theta_rx, dtype):
    """Batch-invariant precompute: build rx_kernel / tx_kernel exactly as the
    PyTorch module does and compose them into one real operator of shape
    (2*A_Rx*A_Tx, B_Rx*2*B_Tx).  Runs once per call, outside the grid."""
    a_rx, b_rx = theta_rx.shape
    a_tx, b_tx = theta_tx.shape
    inv_scale_rx = 1.0 / float(np.sqrt(np.float32(a_rx)))
    inv_scale_tx = 1.0 / float(np.sqrt(np.float32(a_tx)))

    real_rx = jnp.cos(theta_rx) * inv_scale_rx
    imag_rx = jnp.sin(theta_rx) * inv_scale_rx
    real_tx = jnp.cos(theta_tx) * inv_scale_tx
    imag_tx = jnp.sin(theta_tx) * inv_scale_tx

    # Same real-augmented kernels the PyTorch module builds.
    rx_kernel = jnp.concatenate(
        [jnp.concatenate([real_rx, -imag_rx], axis=-1),
         jnp.concatenate([imag_rx, real_rx], axis=-1)], axis=0)   # (2A_Rx, 2B_Rx)
    tx_kernel = jnp.concatenate(
        [jnp.concatenate([real_tx, imag_tx], axis=-1),
         jnp.concatenate([-imag_tx, real_tx], axis=-1)], axis=0)  # (2A_Tx, 2B_Tx)

    # out[r,n] = sum_{p,a} h[p,a] * (rx[p,r]*tx[a,n] + rx[p,B_Rx+r]*tx[A_Tx+a,n])
    w4 = (jnp.einsum('pr,an->parn', rx_kernel[:, :b_rx], tx_kernel[:a_tx, :]) +
          jnp.einsum('pr,an->parn', rx_kernel[:, b_rx:], tx_kernel[a_tx:, :]))
    w4 = w4.astype(jnp.float32)  # compose in f32, round once to `dtype`
    return w4.reshape(2 * a_rx * a_tx, b_rx * 2 * b_tx).astype(dtype)


def _num_tensorcores():
    """Best-effort TensorCore-per-chip count (v7x has 2; v5e/v6e have 1)."""
    try:
        kind = str(getattr(jax.devices()[0], "device_kind", "")).lower()
        if "v7" in kind:
            return 2
    except Exception:
        pass
    return 1


def joint_tx_rx_beamformer(h, theta_tx, theta_rx, *, block_batch=None,
                           compute_dtype=jnp.bfloat16):
    """h: (batch, 2*A_Rx, A_Tx) -> (batch, B_Rx, 2*B_Tx) float32."""
    batch, two_a_rx, a_tx = h.shape
    a_rx, b_rx = theta_rx.shape
    a_tx_p, b_tx = theta_tx.shape
    assert two_a_rx == 2 * a_rx and a_tx_p == a_tx

    k_dim = 2 * a_rx * a_tx          # 512 at demo sizes (4 x 128 lanes)
    n_dim = b_rx * 2 * b_tx          # 128 at demo sizes (lane-dense output slab)

    w_big = _build_fused_operator(theta_tx, theta_rx, compute_dtype)  # (k, n)
    # Row-major reshape: free, no HBM copy.  h keeps its caller dtype in HBM
    # (pass bf16 upstream to halve read traffic); the MXU-side cast happens
    # inside the kernel.
    h_flat = h.reshape(batch, k_dim)

    # Block-size heuristic:
    #   * single-TC chips (v5e/v6e): one big block, up to 1024 rows, to
    #     amortize the ~0.35us per-grid-step overhead and maximize DMA size;
    #   * multi-TC chips (v7x): ensure grid >= num_TCs so "parallel" batch
    #     blocking keeps both cores busy, still capped at 1024 rows.
    if block_batch is None:
        num_tc = _num_tensorcores()
        if num_tc > 1:
            block_batch = min(1024, pl.cdiv(batch, num_tc))
        else:
            block_batch = min(1024, batch)
    # Multiple of 16: sublane-aligned for f32 and packed-sublane-aligned for
    # bf16 inputs.
    block_batch = max(16, ((block_batch + 15) // 16) * 16)
    grid_b = pl.cdiv(batch, block_batch)

    # No padding / slicing: Pallas handles the partial trailing block (batch is
    # the M dim, never contracted; OOB output rows are masked on write).
    cost = pl.CostEstimate(
        flops=2 * batch * k_dim * n_dim,
        transcendentals=0,
        bytes_accessed=(batch * k_dim * jnp.dtype(h_flat.dtype).itemsize
                        + k_dim * n_dim * jnp.dtype(compute_dtype).itemsize
                        + batch * n_dim * 4),
    )

    out_flat = pl.pallas_call(
        _beamformer_kernel,
        out_shape=jax.ShapeDtypeStruct((batch, n_dim), jnp.float32),
        grid_spec=pltpu.PrefetchScalarGridSpec(
            num_scalar_prefetch=0,
            grid=(grid_b,),
            in_specs=[
                pl.BlockSpec((block_batch, k_dim), lambda i: (i, 0)),  # h block
                pl.BlockSpec((k_dim, n_dim), lambda i: (0, 0)),        # W_big (grid-invariant)
            ],
            out_specs=pl.BlockSpec((block_batch, n_dim), lambda i: (i, 0)),
        ),
        compiler_params=pltpu.CompilerParams(
            dimension_semantics=("parallel",)),
        cost_estimate=cost,
    )(h_flat, w_big)

    return out_flat.reshape(batch, b_rx, 2 * b_tx)


def _reference(h, theta_tx, theta_rx):
    """Pure-JAX mirror of the PyTorch forward (for correctness check)."""
    a_rx, b_rx = theta_rx.shape
    a_tx, _ = theta_tx.shape
    scale_tx = jnp.sqrt(jnp.float32(a_tx))
    scale_rx = jnp.sqrt(jnp.float32(a_rx))

    real_rx = jnp.cos(theta_rx) / scale_rx
    imag_rx = jnp.sin(theta_rx) / scale_rx
    rx_kernel = jnp.concatenate(
        [jnp.concatenate([real_rx, -imag_rx], axis=-1),
         jnp.concatenate([imag_rx, real_rx], axis=-1)], axis=0)

    z = jnp.einsum('ab,nac->nbc', rx_kernel, h)
    z_complex = jnp.concatenate([z[:, :b_rx, :], z[:, b_rx:, :]], axis=-1)

    real_tx = jnp.cos(theta_tx) / scale_tx
    imag_tx = jnp.sin(theta_tx) / scale_tx
    tx_kernel = jnp.concatenate(
        [jnp.concatenate([real_tx, imag_tx], axis=-1),
         jnp.concatenate([-imag_tx, real_tx], axis=-1)], axis=0)
    return jnp.matmul(z_complex, tx_kernel)


if __name__ == "__main__":
    # Small shapes consistent with the module.  batch=100 is deliberately NOT
    # a multiple of the (16-aligned) block size, exercising the no-pad /
    # partial-trailing-block path.
    num_antenna_tx = 16
    num_antenna_rx = 16
    num_beam_tx = 8
    num_beam_rx = 8
    batch = 100

    key = jax.random.PRNGKey(0)
    k_ttx, k_trx, k_h = jax.random.split(key, 3)

    # Parameter init: uniform in [0, 2*pi), matching init.uniform_.
    theta_tx = jax.random.uniform(
        k_ttx, (num_antenna_tx, num_beam_tx), jnp.float32, 0.0, 2.0 * np.pi)
    theta_rx = jax.random.uniform(
        k_trx, (num_antenna_rx, num_beam_rx), jnp.float32, 0.0, 2.0 * np.pi)

    # Channel input: (batch, 2*A_Rx, A_Tx) real/imag stacked along dim 1.
    h = jax.random.normal(
        k_h, (batch, 2 * num_antenna_rx, num_antenna_tx), jnp.float32)

    ref = jax.block_until_ready(_reference(h, theta_tx, theta_rx))

    # 1) Exact-precision path (f32 operands): tight tolerance vs. reference.
    out_f32 = jax.block_until_ready(
        joint_tx_rx_beamformer(h, theta_tx, theta_rx,
                               compute_dtype=jnp.float32))
    assert out_f32.shape == (batch, num_beam_rx, 2 * num_beam_tx)
    np.testing.assert_allclose(np.asarray(out_f32), np.asarray(ref),
                               rtol=1e-3, atol=1e-3)

    # 2) Default fast path (bf16 operands, f32 accumulation): looser tolerance
    #    to absorb bf16 operand rounding (~4e-3 relative).
    out_bf16 = jax.block_until_ready(
        joint_tx_rx_beamformer(h, theta_tx, theta_rx))
    assert out_bf16.shape == (batch, num_beam_rx, 2 * num_beam_tx)
    np.testing.assert_allclose(np.asarray(out_bf16), np.asarray(ref),
                               rtol=2e-2, atol=2e-2)

    print("KERNEL_OK")
</pallas_src>

<mosaic_0001>
module attributes {stable_mosaic.version = 11 : i64} {
  func.func @_beamformer_kernel(%arg0: i32, %arg1: memref<112x512xf32, #tpu.memory_space<vmem>>, %arg2: memref<512x128xf32, #tpu.memory_space<vmem>>, %arg3: memref<112x128xf32, #tpu.memory_space<vmem>>) attributes {dimension_semantics = [#tpu.dimension_semantics<parallel>], iteration_bounds = array<i64: 1>, scalar_prefetch = 0 : i64, scratch_operands = 0 : i64, tpu.core_type = #tpu.core_type<tc>, window_params = [{transform_indices = @transform_0, window_bounds = array<i64: 112, 512>}, {pipeline_mode = #tpu.pipeline_mode<synchronous>, transform_indices = @transform_1, window_bounds = array<i64: 512, 128>}, {transform_indices = @transform_2, window_bounds = array<i64: 112, 128>}]} {
    %c0 = arith.constant 0 : index
    %c0_0 = arith.constant 0 : index
    %0 = vector.load %arg1[%c0, %c0_0] : memref<112x512xf32, #tpu.memory_space<vmem>>, vector<112x512xf32>
    %c0_1 = arith.constant 0 : index
    %c0_2 = arith.constant 0 : index
    %1 = vector.load %arg2[%c0_1, %c0_2] : memref<512x128xf32, #tpu.memory_space<vmem>>, vector<512x128xf32>
    %cst = arith.constant dense<0.000000e+00> : vector<112x128xf32>
    %2 = tpu.matmul %0, %1, %cst {dimension_numbers = #tpu.dot_dimension_numbers<[1], [0], [0], [1], [0, 0, 1, 1], [], []>} : vector<112x512xf32>, vector<512x128xf32>, vector<112x128xf32> -> vector<112x128xf32>
    %c0_3 = arith.constant 0 : index
    %c0_4 = arith.constant 0 : index
    %3 = vector.load %arg3[%c0_3, %c0_4] : memref<112x128xf32, #tpu.memory_space<vmem>>, vector<112x128xf32>
    tpu.vector_store %arg3[%c0_3, %c0_4], %2 {strides = array<i32>} : memref<112x128xf32, #tpu.memory_space<vmem>>, vector<112x128xf32>,
    return
  }
  func.func @transform_0(%arg0: i32) -> (i32, i32) {
    %c0_i32 = arith.constant 0 : i32
    %c0_i32_0 = arith.constant 0 : i32
    return %arg0, %c0_i32 : i32, i32
  }
  func.func @transform_1(%arg0: i32) -> (i32, i32) {
    %c0_i32 = arith.constant 0 : i32
    %c0_i32_0 = arith.constant 0 : i32
    %c0_i32_1 = arith.constant 0 : i32
    return %c0_i32, %c0_i32_0 : i32, i32
  }
  func.func @transform_2(%arg0: i32) -> (i32, i32) {
    %c0_i32 = arith.constant 0 : i32
    %c0_i32_0 = arith.constant 0 : i32
    return %arg0, %c0_i32 : i32, i32
  }
}

</mosaic_0001>

<bundles_post_ra>
// kernel: tpu_custom_call.1
= control target key start
LH: loop header
LB: loop body
LE: loop exit
PB: predicated region body
PF: predicated region fallthrough
CT: control target
= control target key end

     0   :  { %7 = vsyncpa [#allocation3], 0  ;;  %s817_s0 = inlined_call_operand.hbm [shape: f32[100,512], index: 0, kind: input, shape index: {}]   ;;  %s818_s1 = inlined_call_operand.hbm [shape: f32[512,128], index: 1, kind: input, shape index: {}]   ;;  %s819_s2 = inlined_call_operand.hbm [shape: f32[100,128], index: 2, kind: output, shape index: {}]  }
   0x1   :  { %8 = vsyncpa [#allocation6], 0 }
   0x2   :  { %9 = vsyncpa [#allocation4], 0 }
   0x3   :  { %14 = vsyncadd [#allocation3], 512  ;;  %s753_s9 = smov [#allocation2]   ;;  %s681_s13 = scalar_lea.hbm %s817_s0, 6656 }
   0x4   :  { %s15_s10 = sshll.u32 %s753_s9, 4  ;;  %p682_p0 = scmp.ne.s32.totalorder %s817_s0, %s681_s13  ;;  %s16_s10 = int_to_ptr.vmem [resolvable:$true] %s15_s10 }
   0x5   :  { %p685_p1 = scmp.lt.u32.totalorder %s681_s13, %s817_s0 }
   0x7   :  { %p687_p2 = pnand %p685_p1, %p682_p0 }
   0x9   :  { %690 = shalt.err (!%p687_p2)
}
   0xa   :  { %s691_s18 = scalar_lea.vmem %s16_s10, 6656  ;;  %s695_s19 = scalar_lea.vmem %s16_s10, 7168 }
   0xb   :  { %p692_p3 = scmp.ne.s32.totalorder %s16_s10, %s691_s18  ;;  %p696_p4 = scmp.lt.s32.totalorder %s16_s10, %s16_s10 }
   0xc   :  { %p697_p5 = scmp.lt.s32.totalorder %s695_s19, %s691_s18 }
   0xe   :  { %p698_p6 = por %p697_p5, %p696_p4 }
  0x10   :  { %p699_p7 = pnand %p698_p6, %p692_p3 }
  0x12   :  { %702 = shalt.err (!%p699_p7)
}
  0x13   :  { %s754_s20 = smov 512   ;;  %s755_s21 = smov 32  }
  0x14   :  { %21 = dma.hbm_to_vmem [thread:$0]  %s817_s0, 6656, %s16_s10, [#allocation3], %s754_s20, %s754_s20, %s755_s21  }
  0x15   :  { %s756_s24 = smov [#allocation5]   ;;  %s703_s28 = scalar_lea.hbm %s818_s1, 8192 }
  0x16   :  { %s27_s25 = sshll.u32 %s756_s24, 4  ;;  %p704_p8 = scmp.ne.s32.totalorder %s818_s1, %s703_s28  ;;  %s28_s25 = int_to_ptr.vmem [resolvable:$true] %s27_s25 }
  0x17   :  { %p707_p9 = scmp.lt.u32.totalorder %s703_s28, %s818_s1 }
  0x19   :  { %p709_p10 = pnand %p707_p9, %p704_p8 }
  0x1b   :  { %712 = shalt.err (!%p709_p10)
}
  0x1c   :  { %s713_s5 = scalar_lea.vmem %s28_s25, 8192  ;;  %p718_p12 = scmp.lt.s32.totalorder %s28_s25, %s28_s25 }
  0x1d   :  { %p714_p11 = scmp.ne.s32.totalorder %s28_s25, %s713_s5  ;;  %p719_p13 = scmp.lt.s32.totalorder %s713_s5, %s713_s5 }
  0x1f   :  { %p720_p0 = por %p719_p13, %p718_p12 }
  0x21   :  { %p721_p1 = pnand %p720_p0, %p714_p11 }
  0x23   :  { %724 = shalt.err (!%p721_p1)
}
  0x24   :  { %s757_s0 = smov 128   ;;  %s758_s6 = smov 8  }
  0x25   :  { %33 = dma.hbm_to_vmem [thread:$0]  %s818_s1, 8192, %s28_s25, [#allocation6], %s757_s0, %s757_s0, %s758_s6  }
  0x26   :  { %747 = dma.done.wait [#allocation3], 7168  }
  0x27   :  { %748 = vsyncadd [#allocation3], 4294960128 }
  0x28   :  { %749 = dma.done.wait [#allocation6], 8192  }
  0x29   :  { %750 = vsyncadd [#allocation6], 4294959104  ;;  %v112_v0 = vld [vmem:[#allocation5 + $0x80] sm:$0xff]  ;;  %v113_v1 = vld [vmem:[#allocation5 + $0x88] sm:$0xff] }
  0x2a   :  { %v144_v2 = vld [vmem:[#allocation5 + $0x180] sm:$0xff]  ;;  %v610_v3 = vpack.c.bf16 %v113_v1, %v112_v0  ;;  %v145_v4 = vld [vmem:[#allocation5 + $0x188] sm:$0xff]  ;;  %v114_v11 = vld [vmem:[#allocation5 + $0x90] sm:$0xff] }
  0x2b   :  { %v96_v5 = vld [vmem:[#allocation5] sm:$0xff]  ;;  %v97_v6 = vld [vmem:[#allocation5 + $0x8] sm:$0xff]  ;;  %v642_v7 = vpack.c.bf16 %v145_v4, %v144_v2  ;;  %v115_v13 = vld [vmem:[#allocation5 + $0x98] sm:$0xff] }
  0x2c   :  { %v612_v8 = vpack.c.bf16 %v97_v6, %v96_v5  ;;  %v128_v9 = vld [vmem:[#allocation5 + $0x100] sm:$0xff]  ;;  %v129_v10 = vld [vmem:[#allocation5 + $0x108] sm:$0xff]  ;;  %611 = vmatprep.subr.bf16.mxu0 %v610_v3  ;;  %v146_v14 = vld [vmem:[#allocation5 + $0x190] sm:$0xff]  ;;  %v614_v16 = vpack.c.bf16 %v115_v13, %v114_v11 }
  0x2d   :  { %v644_v12 = vpack.c.bf16 %v129_v10, %v128_v9  ;;  %v147_v15 = vld [vmem:[#allocation5 + $0x198] sm:$0xff]  ;;  %643 = vmatprep.subr.bf16.mxu1 %v642_v7  ;;  %v98_v18 = vld [vmem:[#allocation5 + $0x10] sm:$0xff]  ;;  %v116_v23 = vld [vmem:[#allocation5 + $0xa0] sm:$0xff] }
  0x2e   :  { %613 = vmatpush3.bf16.msra.mxu0 %v612_v8  ;;  %v646_v17 = vpack.c.bf16 %v147_v15, %v146_v14  ;;  %v99_v19 = vld [vmem:[#allocation5 + $0x18] sm:$0xff]  ;;  %v130_v20 = vld [vmem:[#allocation5 + $0x110] sm:$0xff]  ;;  %v117_v24 = vld [vmem:[#allocation5 + $0xa8] sm:$0xff] }
  0x2f   :  { %645 = vmatpush3.bf16.msra.mxu1 %v644_v12  ;;  %v616_v21 = vpack.c.bf16 %v99_v19, %v98_v18  ;;  %v131_v22 = vld [vmem:[#allocation5 + $0x118] sm:$0xff]  ;;  %615 = vmatprep.subr.bf16.mxu0 %v614_v16  ;;  %v618_v26 = vpack.c.bf16 %v117_v24, %v116_v23  ;;  %v148_v27 = vld [vmem:[#allocation5 + $0x1a0] sm:$0xff]  ;;  %v149_v28 = vld [vmem:[#allocation5 + $0x1a8] sm:$0xff] }
  0x30   :  { %647 = vmatprep.subr.bf16.mxu1 %v646_v17  ;;  %v648_v25 = vpack.c.bf16 %v131_v22, %v130_v20  ;;  %v100_v29 = vld [vmem:[#allocation5 + $0x20] sm:$0xff]  ;;  %v650_v30 = vpack.c.bf16 %v149_v28, %v148_v27  ;;  %v101_v31 = vld [vmem:[#allocation5 + $0x28] sm:$0xff]  ;;  %v118_v35 = vld [vmem:[#allocation5 + $0xb0] sm:$0xff] }
  0x31   :  { %v132_v32 = vld [vmem:[#allocation5 + $0x120] sm:$0xff]  ;;  %v133_v33 = vld [vmem:[#allocation5 + $0x128] sm:$0xff]  ;;  %v620_v34 = vpack.c.bf16 %v101_v31, %v100_v29  ;;  %v119_v36 = vld [vmem:[#allocation5 + $0xb8] sm:$0xff] }
  0x32   :  { %617 = vmatpush3.bf16.msra.mxu0 %v616_v21  ;;  %v150_v37 = vld [vmem:[#allocation5 + $0x1b0] sm:$0xff]  ;;  %v652_v38 = vpack.c.bf16 %v133_v33, %v132_v32  ;;  %v622_v39 = vpack.c.bf16 %v119_v36, %v118_v35  ;;  %v151_v40 = vld [vmem:[#allocation5 + $0x1b8] sm:$0xff]  ;;  %v120_v46 = vld [vmem:[#allocation5 + $0xc0] sm:$0xff] }
  0x33   :  { %649 = vmatpush3.bf16.msra.mxu1 %v648_v25  ;;  %619 = vmatprep.subr.bf16.mxu0 %v618_v26  ;;  %v102_v41 = vld [vmem:[#allocation5 + $0x30] sm:$0xff]  ;;  %v103_v42 = vld [vmem:[#allocation5 + $0x38] sm:$0xff]  ;;  %v654_v43 = vpack.c.bf16 %v151_v40, %v150_v37  ;;  %v121_v47 = vld [vmem:[#allocation5 + $0xc8] sm:$0xff] }
  0x34   :  { %651 = vmatprep.subr.bf16.mxu1 %v650_v30  ;;  %v134_v44 = vld [vmem:[#allocation5 + $0x130] sm:$0xff]  ;;  %v135_v45 = vld [vmem:[#allocation5 + $0x138] sm:$0xff]  ;;  %v152_v48 = vld [vmem:[#allocation5 + $0x1c0] sm:$0xff]  ;;  %v624_v50 = vpack.c.bf16 %v103_v42, %v102_v41  ;;  %v626_v52 = vpack.c.bf16 %v121_v47, %v120_v46 }
  0x35   :  { %v153_v49 = vld [vmem:[#allocation5 + $0x1c8] sm:$0xff]  ;;  %v656_v51 = vpack.c.bf16 %v135_v45, %v134_v44  ;;  %v104_v53 = vld [vmem:[#allocation5 + $0x40] sm:$0xff]  ;;  %v122_v58 = vld [vmem:[#allocation5 + $0xd0] sm:$0xff] }
  0x36   :  { %621 = vmatpush3.bf16.msra.mxu0 %v620_v34  ;;  %v105_v54 = vld [vmem:[#allocation5 + $0x48] sm:$0xff]  ;;  %v136_v55 = vld [vmem:[#allocation5 + $0x140] sm:$0xff]  ;;  %v658_v56 = vpack.c.bf16 %v153_v49, %v152_v48  ;;  %v123_v59 = vld [vmem:[#allocation5 + $0xd8] sm:$0xff] }
  0x37   :  { %653 = vmatpush3.bf16.msra.mxu1 %v652_v38  ;;  %623 = vmatprep.subr.bf16.mxu0 %v622_v39  ;;  %v137_v57 = vld [vmem:[#allocation5 + $0x148] sm:$0xff]  ;;  %v154_v60 = vld [vmem:[#allocation5 + $0x1d0] sm:$0xff]  ;;  %v155_v61 = vld [vmem:[#allocation5 + $0x1d8] sm:$0xff]  ;;  %v628_v62 = vpack.c.bf16 %v105_v54, %v104_v53  ;;  %v630_v0 = vpack.c.bf16 %v123_v59, %v122_v58 }
  0x38   :  { %655 = vmatprep.subr.bf16.mxu1 %v654_v43  ;;  %v660_v63 = vpack.c.bf16 %v137_v57, %v136_v55  ;;  %v106_v1 = vld [vmem:[#allocation5 + $0x50] sm:$0xff]  ;;  %v107_v2 = vld [vmem:[#allocation5 + $0x58] sm:$0xff]  ;;  %v662_v4 = vpack.c.bf16 %v155_v61, %v154_v60  ;;  %v124_v6 = vld [vmem:[#allocation5 + $0xe0] sm:$0xff] }
  0x39   :  { %v138_v3 = vld [vmem:[#allocation5 + $0x150] sm:$0xff]  ;;  %v139_v5 = vld [vmem:[#allocation5 + $0x158] sm:$0xff]  ;;  %v125_v7 = vld [vmem:[#allocation5 + $0xe8] sm:$0xff]  ;;  %v632_v10 = vpack.c.bf16 %v107_v2, %v106_v1 }
  0x3a   :  { %625 = vmatpush3.bf16.msra.mxu0 %v624_v50  ;;  %v156_v8 = vld [vmem:[#allocation5 + $0x1e0] sm:$0xff]  ;;  %v157_v9 = vld [vmem:[#allocation5 + $0x1e8] sm:$0xff]  ;;  %v664_v13 = vpack.c.bf16 %v139_v5, %v138_v3  ;;  %v634_v14 = vpack.c.bf16 %v125_v7, %v124_v6  ;;  %v43_v17 = vld [vmem:[#allocation2 + $0x18] sm:$0xff] }
  0x3b   :  { %657 = vmatpush3.bf16.msra.mxu1 %v656_v51  ;;  %627 = vmatprep.subr.bf16.mxu0 %v626_v52  ;;  %v108_v11 = vld [vmem:[#allocation5 + $0x60] sm:$0xff]  ;;  %v109_v12 = vld [vmem:[#allocation5 + $0x68] sm:$0xff]  ;;  %v666_v18 = vpack.c.bf16 %v157_v9, %v156_v8  ;;  %v126_v20 = vld [vmem:[#allocation5 + $0xf0] sm:$0xff] }
  0x3c   :  { %659 = vmatprep.subr.bf16.mxu1 %v658_v56  ;;  %v140_v15 = vld [vmem:[#allocation5 + $0x160] sm:$0xff]  ;;  %v41_v16 = vld [vmem:[#allocation2 + $0x8] sm:$0xff]  ;;  %v127_v21 = vld [vmem:[#allocation5 + $0xf8] sm:$0xff]  ;;  %359 = vmatprep.mubr.f32.mxu1 %v43_v17  ;;  %v636_v24 = vpack.c.bf16 %v109_v12, %v108_v11 }
  0x3d   :  { %v141_v19 = vld [vmem:[#allocation5 + $0x168] sm:$0xff]  ;;  %224 = vmatprep.mubr.f32.mxu0 %v41_v16  ;;  %v158_v22 = vld [vmem:[#allocation5 + $0x1f0] sm:$0xff]  ;;  %v159_v23 = vld [vmem:[#allocation5 + $0x1f8] sm:$0xff]  ;;  %v638_v26 = vpack.c.bf16 %v127_v21, %v126_v20 }
  0x3e   :  { %629 = vmatpush3.bf16.msra.mxu0 %v628_v62  ;;  %v668_v25 = vpack.c.bf16 %v141_v19, %v140_v15  ;;  %v110_v27 = vld [vmem:[#allocation5 + $0x70] sm:$0xff]  ;;  %v111_v28 = vld [vmem:[#allocation5 + $0x78] sm:$0xff]  ;;  %v670_v29 = vpack.c.bf16 %v159_v23, %v158_v22  ;;  %v40_v34 = vld [vmem:[#allocation2] sm:$0xff] }
  0x3f   :  { %661 = vmatpush3.bf16.msra.mxu1 %v660_v63  ;;  %631 = vmatprep.subr.bf16.mxu0 %v630_v0  ;;  %v142_v30 = vld [vmem:[#allocation5 + $0x170] sm:$0xff]  ;;  %v143_v31 = vld [vmem:[#allocation5 + $0x178] sm:$0xff]  ;;  %v640_v32 = vpack.c.bf16 %v111_v28, %v110_v27  ;;  %v45_v36 = vld [vmem:[#allocation2 + $0x28] sm:$0xff] }
  0x40   :  { %663 = vmatprep.subr.bf16.mxu1 %v662_v4  ;;  %v672_v33 = vpack.c.bf16 %v143_v31, %v142_v30  ;;  %v42_v35 = vld [vmem:[#allocation2 + $0x10] sm:$0xff]  ;;  %v47_v37 = vld [vmem:[#allocation2 + $0x38] sm:$0xff]  ;;  %v44_v38 = vld [vmem:[#allocation2 + $0x20] sm:$0xff] }
  0x41   :  { %v46_v39 = vld [vmem:[#allocation2 + $0x30] sm:$0xff]  ;;  %v49_v40 = vld [vmem:[#allocation2 + $0x48] sm:$0xff]  ;;  %v51_v41 = vld [vmem:[#allocation2 + $0x58] sm:$0xff] }
  0x42   :  { %633 = vmatpush3.bf16.msra.mxu0 %v632_v10  ;;  %v48_v42 = vld [vmem:[#allocation2 + $0x40] sm:$0xff]  ;;  %v50_v43 = vld [vmem:[#allocation2 + $0x50] sm:$0xff]  ;;  %v53_v44 = vld [vmem:[#allocation2 + $0x68] sm:$0xff] }
  0x43   :  { %665 = vmatpush3.bf16.msra.mxu1 %v664_v13  ;;  %635 = vmatprep.subr.bf16.mxu0 %v634_v14  ;;  %v55_v45 = vld [vmem:[#allocation2 + $0x78] sm:$0xff]  ;;  %v52_v46 = vld [vmem:[#allocation2 + $0x60] sm:$0xff]  ;;  %v54_v47 = vld [vmem:[#allocation2 + $0x70] sm:$0xff] }
  0x44   :  { %667 = vmatprep.subr.bf16.mxu1 %v666_v18  ;;  %v57_v48 = vld [vmem:[#allocation2 + $0x88] sm:$0xff]  ;;  %v59_v49 = vld [vmem:[#allocation2 + $0x98] sm:$0xff]  ;;  %v56_v50 = vld [vmem:[#allocation2 + $0x80] sm:$0xff] }
  0x45   :  { %v58_v51 = vld [vmem:[#allocation2 + $0x90] sm:$0xff]  ;;  %v61_v52 = vld [vmem:[#allocation2 + $0xa8] sm:$0xff]  ;;  %v63_v53 = vld [vmem:[#allocation2 + $0xb8] sm:$0xff] }
  0x46   :  { %637 = vmatpush3.bf16.msra.mxu0 %v636_v24  ;;  %v60_v54 = vld [vmem:[#allocation2 + $0xa0] sm:$0xff]  ;;  %v62_v55 = vld [vmem:[#allocation2 + $0xb0] sm:$0xff]  ;;  %v65_v56 = vld [vmem:[#allocation2 + $0xc8] sm:$0xff] }
  0x47   :  { %669 = vmatpush3.bf16.msra.mxu1 %v668_v25  ;;  %639 = vmatprep.subr.bf16.mxu0 %v638_v26  ;;  %v67_v57 = vld [vmem:[#allocation2 + $0xd8] sm:$0xff]  ;;  %v64_v58 = vld [vmem:[#allocation2 + $0xc0] sm:$0xff]  ;;  %v66_v59 = vld [vmem:[#allocation2 + $0xd0] sm:$0xff] }
  0x48   :  { %671 = vmatprep.subr.bf16.mxu1 %v670_v29  ;;  %v69_v60 = vld [vmem:[#allocation2 + $0xe8] sm:$0xff]  ;;  %v71_v61 = vld [vmem:[#allocation2 + $0xf8] sm:$0xff]  ;;  %v68_v62 = vld [vmem:[#allocation2 + $0xe0] sm:$0xff] }
  0x49   :  { %v70_v63 = vld [vmem:[#allocation2 + $0xf0] sm:$0xff]  ;;  %v73_v0 = vld [vmem:[#allocation2 + $0x108] sm:$0xff]  ;;  %v75_v1 = vld [vmem:[#allocation2 + $0x118] sm:$0xff] }
  0x4a   :  { %641 = vmatpush3.bf16.msra.mxu0 %v640_v32  ;;  %v72_v2 = vld [vmem:[#allocation2 + $0x100] sm:$0xff]  ;;  %v74_v3 = vld [vmem:[#allocation2 + $0x110] sm:$0xff]  ;;  %v77_v4 = vld [vmem:[#allocation2 + $0x128] sm:$0xff] }
  0x4b   :  { %673 = vmatpush3.bf16.msra.mxu1 %v672_v33  ;;  %v79_v5 = vld [vmem:[#allocation2 + $0x138] sm:$0xff]  ;;  %v76_v6 = vld [vmem:[#allocation2 + $0x120] sm:$0xff]  ;;  %v78_v7 = vld [vmem:[#allocation2 + $0x130] sm:$0xff] }
  0x4c   :  { %v81_v8 = vld [vmem:[#allocation2 + $0x148] sm:$0xff]  ;;  %v83_v9 = vld [vmem:[#allocation2 + $0x158] sm:$0xff]  ;;  %v80_v10 = vld [vmem:[#allocation2 + $0x140] sm:$0xff] }
  0x4d   :  { %225 = vmatmul.mubr.f32.vlgmr.msra.gmra.mrb[0].mxu0 %v40_v34  ;;  %v82_v11 = vld [vmem:[#allocation2 + $0x150] sm:$0xff]  ;;  %v85_v12 = vld [vmem:[#allocation2 + $0x168] sm:$0xff]  ;;  %v87_v13 = vld [vmem:[#allocation2 + $0x178] sm:$0xff] }
  0x4e   :  { %360 = vmatmul.mubr.f32.vlgmr.msra.gmra.mrb[0].mxu1 %v42_v35  ;;  %229 = vmatprep.mubr.f32.mxu0 %v45_v36  ;;  %v84_v14 = vld [vmem:[#allocation2 + $0x160] sm:$0xff]  ;;  %v86_v15 = vld [vmem:[#allocation2 + $0x170] sm:$0xff]  ;;  %v89_v16 = vld [vmem:[#allocation2 + $0x188] sm:$0xff] }
  0x4f   :  { %364 = vmatprep.mubr.f32.mxu1 %v47_v37  ;;  %v91_v17 = vld [vmem:[#allocation2 + $0x198] sm:$0xff]  ;;  %v88_v18 = vld [vmem:[#allocation2 + $0x180] sm:$0xff]  ;;  %v90_v19 = vld [vmem:[#allocation2 + $0x190] sm:$0xff] }
  0x50   :  { %v93_v20 = vld [vmem:[#allocation2 + $0x1a8] sm:$0xff]  ;;  %v95_v21 = vld [vmem:[#allocation2 + $0x1b8] sm:$0xff]  ;;  %v92_v22 = vld [vmem:[#allocation2 + $0x1a0] sm:$0xff] }
  0x51   :  { %230 = vmatmul.mubr.f32.gmra.mrb[2].mxu0 %v44_v38  ;;  %v94_v23 = vld [vmem:[#allocation2 + $0x1b0] sm:$0xff] }
  0x52   :  { %365 = vmatmul.mubr.f32.gmra.mrb[2].mxu1 %v46_v39  ;;  %234 = vmatprep.mubr.f32.mxu0 %v49_v40 }
  0x53   :  { %369 = vmatprep.mubr.f32.mxu1 %v51_v41 }
  0x55   :  { %235 = vmatmul.mubr.f32.gmra.mrb[4].mxu0 %v48_v42 }
  0x56   :  { %370 = vmatmul.mubr.f32.gmra.mrb[4].mxu1 %v50_v43  ;;  %239 = vmatprep.mubr.f32.mxu0 %v53_v44 }
  0x57   :  { %374 = vmatprep.mubr.f32.mxu1 %v55_v45 }
  0x59   :  { %240 = vmatmul.mubr.f32.gmra.mrb[6].mxu0 %v52_v46 }
  0x5a   :  { %375 = vmatmul.mubr.f32.gmra.mrb[6].mxu1 %v54_v47  ;;  %244 = vmatprep.mubr.f32.mxu0 %v57_v48 }
  0x5b   :  { %379 = vmatprep.mubr.f32.mxu1 %v59_v49 }
  0x5d   :  { %245 = vmatmul.mubr.f32.gmra.mrb[8].mxu0 %v56_v50 }
  0x5e   :  { %380 = vmatmul.mubr.f32.gmra.mrb[8].mxu1 %v58_v51  ;;  %249 = vmatprep.mubr.f32.mxu0 %v61_v52 }
  0x5f   :  { %384 = vmatprep.mubr.f32.mxu1 %v63_v53 }
  0x61   :  { %250 = vmatmul.mubr.f32.gmra.mrb[10].mxu0 %v60_v54 }
  0x62   :  { %385 = vmatmul.mubr.f32.gmra.mrb[10].mxu1 %v62_v55  ;;  %254 = vmatprep.mubr.f32.mxu0 %v65_v56 }
  0x63   :  { %389 = vmatprep.mubr.f32.mxu1 %v67_v57 }
  0x65   :  { %255 = vmatmul.mubr.f32.gmra.mrb[12].mxu0 %v64_v58 }
  0x66   :  { %390 = vmatmul.mubr.f32.gmra.mrb[12].mxu1 %v66_v59  ;;  %259 = vmatprep.mubr.f32.mxu0 %v69_v60 }
  0x67   :  { %394 = vmatprep.mubr.f32.mxu1 %v71_v61 }
  0x69   :  { %260 = vmatmul.mubr.f32.gmra.mrb[14].mxu0 %v68_v62 }
  0x6a   :  { %395 = vmatmul.mubr.f32.gmra.mrb[14].mxu1 %v70_v63  ;;  %264 = vmatprep.mubr.f32.mxu0 %v73_v0 }
  0x6b   :  { %399 = vmatprep.mubr.f32.mxu1 %v75_v1 }
  0x6d   :  { %265 = vmatmul.mubr.f32.gmra.mrb[16].mxu0 %v72_v2 }
  0x6e   :  { %400 = vmatmul.mubr.f32.gmra.mrb[16].mxu1 %v74_v3  ;;  %269 = vmatprep.mubr.f32.mxu0 %v77_v4 }
  0x6f   :  { %404 = vmatprep.mubr.f32.mxu1 %v79_v5 }
  0x71   :  { %270 = vmatmul.mubr.f32.gmra.mrb[18].mxu0 %v76_v6 }
  0x72   :  { %405 = vmatmul.mubr.f32.gmra.mrb[18].mxu1 %v78_v7  ;;  %274 = vmatprep.mubr.f32.mxu0 %v81_v8 }
  0x73   :  { %409 = vmatprep.mubr.f32.mxu1 %v83_v9 }
  0x75   :  { %275 = vmatmul.mubr.f32.gmra.mrb[20].mxu0 %v80_v10 }
  0x76   :  { %410 = vmatmul.mubr.f32.gmra.mrb[20].mxu1 %v82_v11  ;;  %279 = vmatprep.mubr.f32.mxu0 %v85_v12 }
  0x77   :  { %414 = vmatprep.mubr.f32.mxu1 %v87_v13 }
  0x79   :  { %280 = vmatmul.mubr.f32.gmra.mrb[22].mxu0 %v84_v14 }
  0x7a   :  { %415 = vmatmul.mubr.f32.gmra.mrb[22].mxu1 %v86_v15  ;;  %284 = vmatprep.mubr.f32.mxu0 %v89_v16 }
  0x7b   :  { %419 = vmatprep.mubr.f32.mxu1 %v91_v17 }
  0x7d   :  { %285 = vmatmul.mubr.f32.gmra.mrb[24].mxu0 %v88_v18 }
  0x7e   :  { %420 = vmatmul.mubr.f32.gmra.mrb[24].mxu1 %v90_v19  ;;  %289 = vmatprep.mubr.f32.mxu0 %v93_v20 }
  0x7f   :  { %424 = vmatprep.mubr.f32.mxu1 %v95_v21 }
  0x81   :  { %290 = vmatmul.mubr.f32.gmra.mrb[26].mxu0 %v92_v22 }
  0x82   :  { %425 = vmatmul.mubr.f32.gmra.mrb[26].mxu1 %v94_v23 }
 0x120   :  { %v494_v24 = vpop.f32.mrb[0].mxu0 }
 0x121   :  { %v568_v25 = vpop.f32.mrb[0].mxu1  ;;  %v495_v26 = vpop.f32.mrb[1].mxu0 }
 0x122   :  { %v496_v27 = vadd.f32 %v495_v26, %v494_v24  ;;  %v569_v28 = vpop.f32.mrb[1].mxu1 }
 0x123   :  { %v570_v29 = vadd.f32 %v569_v28, %v568_v25 }
 0x124   :  { %v497_v30 = vpop.f32.mrb[2].mxu0 }
 0x125   :  { %v362_v31 = vadd.f32 %v570_v29, %v496_v27  ;;  %v571_v32 = vpop.f32.mrb[2].mxu1  ;;  %v498_v33 = vpop.f32.mrb[3].mxu0 }
 0x126   :  { %v499_v34 = vadd.f32 %v498_v33, %v497_v30  ;;  %v572_v35 = vpop.f32.mrb[3].mxu1 }
 0x127   :  { %430 = vst [vmem:[#allocation7] sm:$0xff] %v362_v31  ;;  %v573_v36 = vadd.f32 %v572_v35, %v571_v32 }
 0x128   :  { %v500_v37 = vpop.f32.mrb[4].mxu0 }
 0x129   :  { %v367_v38 = vadd.f32 %v573_v36, %v499_v34  ;;  %v574_v39 = vpop.f32.mrb[4].mxu1  ;;  %v501_v40 = vpop.f32.mrb[5].mxu0 }
 0x12a   :  { %v502_v41 = vadd.f32 %v501_v40, %v500_v37  ;;  %v575_v42 = vpop.f32.mrb[5].mxu1 }
 0x12b   :  { %431 = vst [vmem:[#allocation7 + $0x8] sm:$0xff] %v367_v38  ;;  %v576_v43 = vadd.f32 %v575_v42, %v574_v39 }
 0x12c   :  { %v503_v44 = vpop.f32.mrb[6].mxu0 }
 0x12d   :  { %v372_v45 = vadd.f32 %v576_v43, %v502_v41  ;;  %v577_v46 = vpop.f32.mrb[6].mxu1  ;;  %v504_v47 = vpop.f32.mrb[7].mxu0 }
 0x12e   :  { %v505_v48 = vadd.f32 %v504_v47, %v503_v44  ;;  %v578_v49 = vpop.f32.mrb[7].mxu1 }
 0x12f   :  { %432 = vst [vmem:[#allocation7 + $0x10] sm:$0xff] %v372_v45  ;;  %v579_v50 = vadd.f32 %v578_v49, %v577_v46 }
 0x130   :  { %v506_v51 = vpop.f32.mrb[8].mxu0 }
 0x131   :  { %v377_v52 = vadd.f32 %v579_v50, %v505_v48  ;;  %v580_v53 = vpop.f32.mrb[8].mxu1  ;;  %v507_v54 = vpop.f32.mrb[9].mxu0 }
 0x132   :  { %v508_v55 = vadd.f32 %v507_v54, %v506_v51  ;;  %v581_v56 = vpop.f32.mrb[9].mxu1 }
 0x133   :  { %433 = vst [vmem:[#allocation7 + $0x18] sm:$0xff] %v377_v52  ;;  %v582_v57 = vadd.f32 %v581_v56, %v580_v53 }
 0x134   :  { %v509_v58 = vpop.f32.mrb[10].mxu0 }
 0x135   :  { %v382_v59 = vadd.f32 %v582_v57, %v508_v55  ;;  %v583_v60 = vpop.f32.mrb[10].mxu1  ;;  %v510_v61 = vpop.f32.mrb[11].mxu0 }
 0x136   :  { %v511_v62 = vadd.f32 %v510_v61, %v509_v58  ;;  %v584_v63 = vpop.f32.mrb[11].mxu1 }
 0x137   :  { %434 = vst [vmem:[#allocation7 + $0x20] sm:$0xff] %v382_v59  ;;  %v585_v0 = vadd.f32 %v584_v63, %v583_v60 }
 0x138   :  { %v512_v1 = vpop.f32.mrb[12].mxu0 }
 0x139   :  { %v387_v2 = vadd.f32 %v585_v0, %v511_v62  ;;  %v586_v3 = vpop.f32.mrb[12].mxu1  ;;  %v513_v4 = vpop.f32.mrb[13].mxu0 }
 0x13a   :  { %v514_v5 = vadd.f32 %v513_v4, %v512_v1  ;;  %v587_v6 = vpop.f32.mrb[13].mxu1 }
 0x13b   :  { %435 = vst [vmem:[#allocation7 + $0x28] sm:$0xff] %v387_v2  ;;  %v588_v7 = vadd.f32 %v587_v6, %v586_v3 }
 0x13c   :  { %v515_v8 = vpop.f32.mrb[14].mxu0 }
 0x13d   :  { %v392_v9 = vadd.f32 %v588_v7, %v514_v5  ;;  %v589_v10 = vpop.f32.mrb[14].mxu1  ;;  %v516_v11 = vpop.f32.mrb[15].mxu0 }
 0x13e   :  { %v517_v12 = vadd.f32 %v516_v11, %v515_v8  ;;  %v590_v13 = vpop.f32.mrb[15].mxu1 }
 0x13f   :  { %436 = vst [vmem:[#allocation7 + $0x30] sm:$0xff] %v392_v9  ;;  %v591_v14 = vadd.f32 %v590_v13, %v589_v10 }
 0x140   :  { %v518_v15 = vpop.f32.mrb[16].mxu0 }
 0x141   :  { %v397_v16 = vadd.f32 %v591_v14, %v517_v12  ;;  %v592_v17 = vpop.f32.mrb[16].mxu1  ;;  %v519_v18 = vpop.f32.mrb[17].mxu0 }
 0x142   :  { %v520_v19 = vadd.f32 %v519_v18, %v518_v15  ;;  %v593_v20 = vpop.f32.mrb[17].mxu1 }
 0x143   :  { %437 = vst [vmem:[#allocation7 + $0x38] sm:$0xff] %v397_v16  ;;  %v594_v21 = vadd.f32 %v593_v20, %v592_v17 }
 0x144   :  { %v521_v22 = vpop.f32.mrb[18].mxu0 }
 0x145   :  { %v402_v23 = vadd.f32 %v594_v21, %v520_v19  ;;  %v595_v24 = vpop.f32.mrb[18].mxu1  ;;  %v522_v25 = vpop.f32.mrb[19].mxu0 }
 0x146   :  { %v523_v26 = vadd.f32 %v522_v25, %v521_v22  ;;  %v596_v27 = vpop.f32.mrb[19].mxu1 }
 0x147   :  { %438 = vst [vmem:[#allocation7 + $0x40] sm:$0xff] %v402_v23  ;;  %v597_v28 = vadd.f32 %v596_v27, %v595_v24 }
 0x148   :  { %v524_v29 = vpop.f32.mrb[20].mxu0 }
 0x149   :  { %v407_v30 = vadd.f32 %v597_v28, %v523_v26  ;;  %v598_v31 = vpop.f32.mrb[20].mxu1  ;;  %v525_v32 = vpop.f32.mrb[21].mxu0 }
 0x14a   :  { %v526_v33 = vadd.f32 %v525_v32, %v524_v29  ;;  %v599_v34 = vpop.f32.mrb[21].mxu1 }
 0x14b   :  { %439 = vst [vmem:[#allocation7 + $0x48] sm:$0xff] %v407_v30  ;;  %v600_v35 = vadd.f32 %v599_v34, %v598_v31 }
 0x14c   :  { %v527_v36 = vpop.f32.mrb[22].mxu0 }
 0x14d   :  { %v412_v37 = vadd.f32 %v600_v35, %v526_v33  ;;  %v601_v38 = vpop.f32.mrb[22].mxu1  ;;  %v528_v39 = vpop.f32.mrb[23].mxu0 }
 0x14e   :  { %v529_v40 = vadd.f32 %v528_v39, %v527_v36  ;;  %v602_v41 = vpop.f32.mrb[23].mxu1 }
 0x14f   :  { %440 = vst [vmem:[#allocation7 + $0x50] sm:$0xff] %v412_v37  ;;  %v603_v42 = vadd.f32 %v602_v41, %v601_v38 }
 0x150   :  { %v530_v43 = vpop.f32.mrb[24].mxu0 }
 0x151   :  { %v417_v44 = vadd.f32 %v603_v42, %v529_v40  ;;  %v604_v45 = vpop.f32.mrb[24].mxu1  ;;  %v531_v46 = vpop.f32.mrb[25].mxu0 }
 0x152   :  { %v532_v47 = vadd.f32 %v531_v46, %v530_v43  ;;  %v605_v48 = vpop.f32.mrb[25].mxu1 }
 0x153   :  { %441 = vst [vmem:[#allocation7 + $0x58] sm:$0xff] %v417_v44  ;;  %v606_v49 = vadd.f32 %v605_v48, %v604_v45 }
 0x154   :  { %v533_v50 = vpop.f32.mrb[26].mxu0 }
 0x155   :  { %v422_v51 = vadd.f32 %v606_v49, %v532_v47  ;;  %v607_v52 = vpop.f32.mrb[26].mxu1  ;;  %v534_v53 = vpop.f32.mrb[27].mxu0 }
 0x156   :  { %v535_v54 = vadd.f32 %v534_v53, %v533_v50  ;;  %v608_v55 = vpop.f32.mrb[27].mxu1 }
 0x157   :  { %442 = vst [vmem:[#allocation7 + $0x60] sm:$0xff] %v422_v51  ;;  %v609_v56 = vadd.f32 %v608_v55, %v607_v52 }
 0x159   :  { %v427_v57 = vadd.f32 %v609_v56, %v535_v54 }
 0x15b   :  { %443 = vst [vmem:[#allocation7 + $0x68] sm:$0xff] %v427_v57 }
 0x15c   :  { %448 = vsyncadd [#allocation4], 128  ;;  %s759_s1 = smov [#allocation7]  }
 0x15d   :  { %s449_s9 = sshll.u32 %s759_s1, 4  ;;  %s450_s9 = int_to_ptr.vmem [resolvable:$true] %s449_s9 }
 0x15e   :  { %s725_s10 = scalar_lea.vmem %s450_s9, 1664  ;;  %s729_s11 = scalar_lea.vmem %s450_s9, 1792 }
 0x15f   :  { %p726_p2 = scmp.ne.s32.totalorder %s450_s9, %s725_s10  ;;  %p730_p3 = scmp.lt.s32.totalorder %s450_s9, %s450_s9 }
 0x160   :  { %p731_p4 = scmp.lt.s32.totalorder %s729_s11, %s725_s10 }
 0x162   :  { %p732_p5 = por %p731_p4, %p730_p3 }
 0x164   :  { %p733_p6 = pnand %p732_p5, %p726_p2 }
 0x166   :  { %736 = shalt.err (!%p733_p6)
}
 0x167   :  { %s737_s14 = scalar_lea.hbm %s819_s2, 1664 }
 0x168   :  { %p738_p7 = scmp.ne.s32.totalorder %s819_s2, %s737_s14  ;;  %p741_p8 = scmp.lt.u32.totalorder %s737_s14, %s819_s2 }
 0x16a   :  { %p743_p9 = pnand %p741_p8, %p738_p7 }
 0x16c   :  { %746 = shalt.err (!%p743_p9)
}
 0x16d   :  { %455 = dma.vmem_to_hbm [thread:$0]  %s450_s9, 1664, %s819_s2, [#allocation4], %s757_s0, %s757_s0, %s758_s6  }
 0x16e   :  { %751 = dma.done.wait [#allocation4], 1792  }
 0x16f   :  { %752 = vsyncadd [#allocation4], 4294965504 }
 0x170   :  { %459 = vsyncpa [#allocation3], 1 }
 0x171   :  { %460 = vsyncpa [#allocation6], 1 }
 0x172   :  { %461 = vsyncpa [#allocation4], 1 }

</bundles_post_ra>
